<compile_context>
chip_gen: v6e
topology: v6e:2x2x1
jax: 0.10.0
libtpu: 0.0.40
codegen_flags: <defaults>
</compile_context>

<pallas_src>
import functools

import jax
import jax.numpy as jnp
from jax.experimental import pallas as pl
from jax.experimental.pallas import tpu as pltpu


def _cross_attention_kernel(q_in_ref, kv_in_ref,
                            wq_ref, bq_ref,
                            wkv_ref, bkv_ref,
                            o_ref,
                            *, num_heads: int, head_dim: int, scale: float,
                            use_bf16_matmul: bool):
    TB, Lq, Dq = q_in_ref.shape
    _, Lk, Dk = kv_in_ref.shape
    mm_dtype = jnp.bfloat16 if use_bf16_matmul else jnp.float32

    x_q = q_in_ref[...].astype(jnp.float32)      # (TB, Lq, Dq)
    x_kv = kv_in_ref[...].astype(jnp.float32)    # (TB, Lk, Dk)

    # Lane/sublane-dense projections. Weights are pre-transposed to (in, out)
    # on the host, and Wk/Wv are fused into one (Dk, 2*Dq) matrix.
    q2 = jnp.dot(x_q.reshape(TB * Lq, Dq).astype(mm_dtype),
                 wq_ref[...].astype(mm_dtype),
                 preferred_element_type=jnp.float32) + bq_ref[...]      # (TB*Lq, Dq)
    kv2 = jnp.dot(x_kv.reshape(TB * Lk, Dk).astype(mm_dtype),
                  wkv_ref[...].astype(mm_dtype),
                  preferred_element_type=jnp.float32) + bkv_ref[...]    # (TB*Lk, 2*Dq)

    # Fold the softmax scale into q once (cheaper than scaling every score).
    q = (q2 * scale).reshape(TB, Lq, Dq)
    k = kv2[:, :Dq].reshape(TB, Lk, Dq)
    v = kv2[:, Dq:].reshape(TB, Lk, Dq)

    # Per-head attention. Heads are unrolled (small H); only one (TB, Lq, Lk)
    # score/prob tile is live per head, outputs are gathered and stored once.
    head_outs = []
    for h in range(num_heads):
        lo = h * head_dim
        hi = lo + head_dim
        qh = q[:, :, lo:hi]                      # (TB, Lq, dh)
        kh = k[:, :, lo:hi]                      # (TB, Lk, dh)
        vh = v[:, :, lo:hi]                      # (TB, Lk, dh)

        # Contract last dims directly — no transposed copy of kh.
        s = jax.lax.dot_general(
            qh.astype(mm_dtype), kh.astype(mm_dtype),
            (((2,), (2,)), ((0,), (0,))),
            preferred_element_type=jnp.float32)                         # (TB, Lq, Lk)

        s = s - jnp.max(s, axis=-1, keepdims=True)
        p = jnp.exp(s)
        p = p * pl.reciprocal(jnp.sum(p, axis=-1, keepdims=True), approx=True)

        oh = jax.lax.dot_general(
            p.astype(mm_dtype), vh.astype(mm_dtype),
            (((2,), (1,)), ((0,), (0,))),
            preferred_element_type=jnp.float32)                         # (TB, Lq, dh)
        head_outs.append(oh)

    # One lane-dense (Dq-wide) store per tile instead of H masked 8-lane stores.
    out = jnp.concatenate(head_outs, axis=-1) + x_q                     # (TB, Lq, Dq)
    o_ref[...] = out.astype(o_ref.dtype)


def _vmem_limit_bytes(TB, Lq, Lk, Dq, Dk):
    """Rough per-step VMEM estimate with generous headroom, clamped to safe bounds."""
    f32 = 4
    io = 2 * (2 * TB * Lq * Dq + TB * Lk * Dk) * f32            # double-buffered blocks
    wts = 2 * (Dq * Dq + Dq + Dk * 2 * Dq + 2 * Dq) * f32
    inter = TB * (3 * Lq * Dq + 2 * Lk * Dq + 2 * Lq * Lk) * f32
    est = io + wts + inter
    # Floor at 32 MiB (>= default scoped limits), cap at 48 MiB (headroom on v7x's 64 MiB).
    return int(min(max(4 * est, 32 * 1024 * 1024), 48 * 1024 * 1024))


def cross_attention(query, keyval, params, num_heads: int,
                    *, batch_block: int = 8, use_bf16_matmul: bool = False):
    """Pallas implementation of Cross_Attention.forward."""
    B, Lq, Dq = query.shape
    _, Lk, Dk = keyval.shape
    assert Dq % num_heads == 0, "query_dim must be divisible by num_heads"
    head_dim = Dq // num_heads
    scale = float(head_dim) ** (-0.5)

    # Batch-block the grid: fewer grid steps, each with real per-step work.
    TB = max(1, min(batch_block, B))
    grid_b = pl.cdiv(B, TB)

    # One-time host-side weight prep: transpose to (in, out), fuse K/V.
    wq_t = jnp.asarray(params["wq"]).T                              # (Dq, Dq)
    bq = jnp.asarray(params["bq"]).reshape(1, Dq)
    wkv_t = jnp.concatenate([jnp.asarray(params["wk"]).T,
                             jnp.asarray(params["wv"]).T], axis=1)  # (Dk, 2*Dq)
    bkv = jnp.concatenate([jnp.asarray(params["bk"]),
                           jnp.asarray(params["bv"])]).reshape(1, 2 * Dq)

    kernel = functools.partial(
        _cross_attention_kernel,
        num_heads=num_heads, head_dim=head_dim, scale=scale,
        use_bf16_matmul=use_bf16_matmul,
    )

    return pl.pallas_call(
        kernel,
        out_shape=jax.ShapeDtypeStruct((B, Lq, Dq), query.dtype),
        grid_spec=pltpu.PrefetchScalarGridSpec(
            num_scalar_prefetch=0,
            grid=(grid_b,),
            in_specs=[
                pl.BlockSpec((TB, Lq, Dq), lambda b: (b, 0, 0)),     # query block
                pl.BlockSpec((TB, Lk, Dk), lambda b: (b, 0, 0)),     # keyval block
                pl.BlockSpec((Dq, Dq), lambda b: (0, 0)),            # Wq^T (in, out)
                pl.BlockSpec((1, Dq), lambda b: (0, 0)),             # bq
                pl.BlockSpec((Dk, 2 * Dq), lambda b: (0, 0)),        # [Wk^T | Wv^T]
                pl.BlockSpec((1, 2 * Dq), lambda b: (0, 0)),         # [bk | bv]
            ],
            out_specs=pl.BlockSpec((TB, Lq, Dq), lambda b: (b, 0, 0)),
        ),
        compiler_params=pltpu.CompilerParams(
            dimension_semantics=("parallel",),
            vmem_limit_bytes=_vmem_limit_bytes(TB, Lq, Lk, Dq, Dk),
        ),
    )(query, keyval, wq_t, bq, wkv_t, bkv)


def cross_attention_ref(query, keyval, params, num_heads: int):
    """Pure-JAX reference matching the PyTorch forward exactly."""
    B, Lq, Dq = query.shape
    head_dim = Dq // num_heads
    scale = float(head_dim) ** (-0.5)

    q = query @ params["wq"].T + params["bq"]
    k = keyval @ params["wk"].T + params["bk"]
    v = keyval @ params["wv"].T + params["bv"]

    def split(x):  # (B, L, D) -> (B, H, L, dh)
        B_, L, _ = x.shape
        return x.reshape(B_, L, num_heads, head_dim).transpose(0, 2, 1, 3)

    q, k, v = split(q), split(k), split(v)
    attn = jnp.einsum("bhqd,bhkd->bhqk", q, k) * scale
    attn = jax.nn.softmax(attn, axis=-1)
    out = jnp.einsum("bhqk,bhkd->bhqd", attn, v)
    out = out.transpose(0, 2, 1, 3).reshape(B, Lq, Dq)
    return out + query


if __name__ == "__main__":
    # Small shapes consistent with the module's forward.
    B, Lq, Lk = 2, 8, 16
    query_dim, keyval_dim, num_heads = 32, 16, 4

    key = jax.random.PRNGKey(0)
    k_q, k_kv, k_wq, k_bq, k_wk, k_bk, k_wv, k_bv = jax.random.split(key, 8)

    query = jax.random.normal(k_q, (B, Lq, query_dim), dtype=jnp.float32)
    keyval = jax.random.normal(k_kv, (B, Lk, keyval_dim), dtype=jnp.float32)

    # Deterministic parameter init (nn.Linear shapes: W is (out, in), b is (out,)).
    params = {
        "wq": jax.random.normal(k_wq, (query_dim, query_dim), dtype=jnp.float32) * 0.05,
        "bq": jax.random.normal(k_bq, (query_dim,), dtype=jnp.float32) * 0.05,
        "wk": jax.random.normal(k_wk, (query_dim, keyval_dim), dtype=jnp.float32) * 0.05,
        "bk": jax.random.normal(k_bk, (query_dim,), dtype=jnp.float32) * 0.05,
        "wv": jax.random.normal(k_wv, (query_dim, keyval_dim), dtype=jnp.float32) * 0.05,
        "bv": jax.random.normal(k_bv, (query_dim,), dtype=jnp.float32) * 0.05,
    }

    out = cross_attention(query, keyval, params, num_heads)
    out = jax.block_until_ready(out)

    ref = cross_attention_ref(query, keyval, params, num_heads)
    assert out.shape == (B, Lq, query_dim)
    # Tolerance slightly loosened vs 1e-5 for the approx-reciprocal softmax denom.
    assert jnp.allclose(out, ref, atol=5e-3, rtol=5e-3), "mismatch vs reference"

    print("KERNEL_OK")
</pallas_src>

<mosaic_0001>
module attributes {stable_mosaic.version = 11 : i64} {
  func.func @_cross_attention_kernel(%arg0: i32, %arg1: memref<2x8x32xf32, #tpu.memory_space<vmem>>, %arg2: memref<2x16x16xf32, #tpu.memory_space<vmem>>, %arg3: memref<32x32xf32, #tpu.memory_space<vmem>>, %arg4: memref<1x32xf32, #tpu.memory_space<vmem>>, %arg5: memref<16x64xf32, #tpu.memory_space<vmem>>, %arg6: memref<1x64xf32, #tpu.memory_space<vmem>>, %arg7: memref<2x8x32xf32, #tpu.memory_space<vmem>>) attributes {dimension_semantics = [#tpu.dimension_semantics<parallel>], iteration_bounds = array<i64: 1>, scalar_prefetch = 0 : i64, scratch_operands = 0 : i64, tpu.core_type = #tpu.core_type<tc>, window_params = [{transform_indices = @transform_0, window_bounds = array<i64: 2, 8, 32>}, {transform_indices = @transform_1, window_bounds = array<i64: 2, 16, 16>}, {pipeline_mode = #tpu.pipeline_mode<synchronous>, transform_indices = @transform_2, window_bounds = array<i64: 32, 32>}, {pipeline_mode = #tpu.pipeline_mode<synchronous>, transform_indices = @transform_3, window_bounds = array<i64: 1, 32>}, {pipeline_mode = #tpu.pipeline_mode<synchronous>, transform_indices = @transform_4, window_bounds = array<i64: 16, 64>}, {pipeline_mode = #tpu.pipeline_mode<synchronous>, transform_indices = @transform_5, window_bounds = array<i64: 1, 64>}, {transform_indices = @transform_6, window_bounds = array<i64: 2, 8, 32>}]} {
    %c0 = arith.constant 0 : index
    %c0_0 = arith.constant 0 : index
    %c0_1 = arith.constant 0 : index
    %0 = vector.load %arg1[%c0, %c0_0, %c0_1] : memref<2x8x32xf32, #tpu.memory_space<vmem>>, vector<2x8x32xf32>
    %c0_2 = arith.constant 0 : index
    %c0_3 = arith.constant 0 : index
    %c0_4 = arith.constant 0 : index
    %1 = vector.load %arg2[%c0_2, %c0_3, %c0_4] : memref<2x16x16xf32, #tpu.memory_space<vmem>>, vector<2x16x16xf32>
    %2 = vector.shape_cast %0 : vector<2x8x32xf32> to vector<16x32xf32>
    %c0_5 = arith.constant 0 : index
    %c0_6 = arith.constant 0 : index
    %3 = vector.load %arg3[%c0_5, %c0_6] : memref<32x32xf32, #tpu.memory_space<vmem>>, vector<32x32xf32>
    %cst = arith.constant dense<0.000000e+00> : vector<16x32xf32>
    %4 = tpu.matmul %2, %3, %cst {dimension_numbers = #tpu.dot_dimension_numbers<[1], [0], [0], [1], [0, 0, 1, 1], [], []>} : vector<16x32xf32>, vector<32x32xf32>, vector<16x32xf32> -> vector<16x32xf32>
    %c0_7 = arith.constant 0 : index
    %c0_8 = arith.constant 0 : index
    %5 = vector.load %arg4[%c0_7, %c0_8] : memref<1x32xf32, #tpu.memory_space<vmem>>, vector<1x32xf32>
    %6 = vector.broadcast %5 : vector<1x32xf32> to vector<16x32xf32>
    %7 = arith.addf %4, %6 : vector<16x32xf32>
    %8 = vector.shape_cast %1 : vector<2x16x16xf32> to vector<32x16xf32>
    %c0_9 = arith.constant 0 : index
    %c0_10 = arith.constant 0 : index
    %9 = vector.load %arg5[%c0_9, %c0_10] : memref<16x64xf32, #tpu.memory_space<vmem>>, vector<16x64xf32>
    %cst_11 = arith.constant dense<0.000000e+00> : vector<32x64xf32>
    %10 = tpu.matmul %8, %9, %cst_11 {dimension_numbers = #tpu.dot_dimension_numbers<[1], [0], [0], [1], [0, 0, 1, 1], [], []>} : vector<32x16xf32>, vector<16x64xf32>, vector<32x64xf32> -> vector<32x64xf32>
    %c0_12 = arith.constant 0 : index
    %c0_13 = arith.constant 0 : index
    %11 = vector.load %arg6[%c0_12, %c0_13] : memref<1x64xf32, #tpu.memory_space<vmem>>, vector<1x64xf32>
    %12 = vector.broadcast %11 : vector<1x64xf32> to vector<32x64xf32>
    %13 = arith.addf %10, %12 : vector<32x64xf32>
    %cst_14 = arith.constant 0.353553385 : f32
    %14 = vector.broadcast %cst_14 : f32 to vector<16x32xf32>
    %15 = arith.mulf %7, %14 : vector<16x32xf32>
    %16 = vector.shape_cast %15 : vector<16x32xf32> to vector<2x8x32xf32>
    %17 = vector.extract_strided_slice %13 {offsets = [0, 0], sizes = [32, 32], strides = [1, 1]} : vector<32x64xf32> to vector<32x32xf32>
    %18 = vector.shape_cast %17 : vector<32x32xf32> to vector<2x16x32xf32>
    %19 = vector.extract_strided_slice %13 {offsets = [0, 32], sizes = [32, 32], strides = [1, 1]} : vector<32x64xf32> to vector<32x32xf32>
    %20 = vector.shape_cast %19 : vector<32x32xf32> to vector<2x16x32xf32>
    %21 = vector.extract_strided_slice %16 {offsets = [0, 0, 0], sizes = [2, 8, 8], strides = [1, 1, 1]} : vector<2x8x32xf32> to vector<2x8x8xf32>
    %22 = vector.extract_strided_slice %18 {offsets = [0, 0, 0], sizes = [2, 16, 8], strides = [1, 1, 1]} : vector<2x16x32xf32> to vector<2x16x8xf32>
    %23 = vector.extract_strided_slice %20 {offsets = [0, 0, 0], sizes = [2, 16, 8], strides = [1, 1, 1]} : vector<2x16x32xf32> to vector<2x16x8xf32>
    %cst_15 = arith.constant dense<0.000000e+00> : vector<2x8x16xf32>
    %24 = tpu.matmul %21, %22, %cst_15 {dimension_numbers = #tpu.dot_dimension_numbers<[2], [2], [1], [1], [0, 0, 0, 1, 1, 1], [0], [0]>} : vector<2x8x8xf32>, vector<2x16x8xf32>, vector<2x8x16xf32> -> vector<2x8x16xf32>
    %cst_16 = arith.constant dense<0xFF800000> : vector<2x8xf32>
    %25 = vector.multi_reduction <maximumf>, %24, %cst_16 [2] : vector<2x8x16xf32> to vector<2x8xf32>
    %26 = vector.shape_cast %25 : vector<2x8xf32> to vector<2x8x1xf32>
    %27 = vector.broadcast %26 : vector<2x8x1xf32> to vector<2x8x16xf32>
    %28 = arith.subf %24, %27 : vector<2x8x16xf32>
    %29 = math.exp %28 : vector<2x8x16xf32>
    %cst_17 = arith.constant dense<0.000000e+00> : vector<2x8xf32>
    %30 = vector.multi_reduction <add>, %29, %cst_17 [2] : vector<2x8x16xf32> to vector<2x8xf32>
    %31 = vector.shape_cast %30 : vector<2x8xf32> to vector<2x8x1xf32>
    %32 = tpu.reciprocal %31 {approx = true} : vector<2x8x1xf32> -> vector<2x8x1xf32>
    %33 = vector.broadcast %32 : vector<2x8x1xf32> to vector<2x8x16xf32>
    %34 = arith.mulf %29, %33 : vector<2x8x16xf32>
    %cst_18 = arith.constant dense<0.000000e+00> : vector<2x8x8xf32>
    %35 = tpu.matmul %34, %23, %cst_18 {dimension_numbers = #tpu.dot_dimension_numbers<[2], [1], [1], [2], [0, 0, 0, 1, 1, 2], [0], [0]>} : vector<2x8x16xf32>, vector<2x16x8xf32>, vector<2x8x8xf32> -> vector<2x8x8xf32>
    %36 = vector.extract_strided_slice %16 {offsets = [0, 0, 8], sizes = [2, 8, 8], strides = [1, 1, 1]} : vector<2x8x32xf32> to vector<2x8x8xf32>
    %37 = vector.extract_strided_slice %18 {offsets = [0, 0, 8], sizes = [2, 16, 8], strides = [1, 1, 1]} : vector<2x16x32xf32> to vector<2x16x8xf32>
    %38 = vector.extract_strided_slice %20 {offsets = [0, 0, 8], sizes = [2, 16, 8], strides = [1, 1, 1]} : vector<2x16x32xf32> to vector<2x16x8xf32>
    %cst_19 = arith.constant dense<0.000000e+00> : vector<2x8x16xf32>
    %39 = tpu.matmul %36, %37, %cst_19 {dimension_numbers = #tpu.dot_dimension_numbers<[2], [2], [1], [1], [0, 0, 0, 1, 1, 1], [0], [0]>} : vector<2x8x8xf32>, vector<2x16x8xf32>, vector<2x8x16xf32> -> vector<2x8x16xf32>
    %cst_20 = arith.constant dense<0xFF800000> : vector<2x8xf32>
    %40 = vector.multi_reduction <maximumf>, %39, %cst_20 [2] : vector<2x8x16xf32> to vector<2x8xf32>
    %41 = vector.shape_cast %40 : vector<2x8xf32> to vector<2x8x1xf32>
    %42 = vector.broadcast %41 : vector<2x8x1xf32> to vector<2x8x16xf32>
    %43 = arith.subf %39, %42 : vector<2x8x16xf32>
    %44 = math.exp %43 : vector<2x8x16xf32>
    %cst_21 = arith.constant dense<0.000000e+00> : vector<2x8xf32>
    %45 = vector.multi_reduction <add>, %44, %cst_21 [2] : vector<2x8x16xf32> to vector<2x8xf32>
    %46 = vector.shape_cast %45 : vector<2x8xf32> to vector<2x8x1xf32>
    %47 = tpu.reciprocal %46 {approx = true} : vector<2x8x1xf32> -> vector<2x8x1xf32>
    %48 = vector.broadcast %47 : vector<2x8x1xf32> to vector<2x8x16xf32>
    %49 = arith.mulf %44, %48 : vector<2x8x16xf32>
    %cst_22 = arith.constant dense<0.000000e+00> : vector<2x8x8xf32>
    %50 = tpu.matmul %49, %38, %cst_22 {dimension_numbers = #tpu.dot_dimension_numbers<[2], [1], [1], [2], [0, 0, 0, 1, 1, 2], [0], [0]>} : vector<2x8x16xf32>, vector<2x16x8xf32>, vector<2x8x8xf32> -> vector<2x8x8xf32>
    %51 = vector.extract_strided_slice %16 {offsets = [0, 0, 16], sizes = [2, 8, 8], strides = [1, 1, 1]} : vector<2x8x32xf32> to vector<2x8x8xf32>
    %52 = vector.extract_strided_slice %18 {offsets = [0, 0, 16], sizes = [2, 16, 8], strides = [1, 1, 1]} : vector<2x16x32xf32> to vector<2x16x8xf32>
    %53 = vector.extract_strided_slice %20 {offsets = [0, 0, 16], sizes = [2, 16, 8], strides = [1, 1, 1]} : vector<2x16x32xf32> to vector<2x16x8xf32>
    %cst_23 = arith.constant dense<0.000000e+00> : vector<2x8x16xf32>
    %54 = tpu.matmul %51, %52, %cst_23 {dimension_numbers = #tpu.dot_dimension_numbers<[2], [2], [1], [1], [0, 0, 0, 1, 1, 1], [0], [0]>} : vector<2x8x8xf32>, vector<2x16x8xf32>, vector<2x8x16xf32> -> vector<2x8x16xf32>
    %cst_24 = arith.constant dense<0xFF800000> : vector<2x8xf32>
    %55 = vector.multi_reduction <maximumf>, %54, %cst_24 [2] : vector<2x8x16xf32> to vector<2x8xf32>
    %56 = vector.shape_cast %55 : vector<2x8xf32> to vector<2x8x1xf32>
    %57 = vector.broadcast %56 : vector<2x8x1xf32> to vector<2x8x16xf32>
    %58 = arith.subf %54, %57 : vector<2x8x16xf32>
    %59 = math.exp %58 : vector<2x8x16xf32>
    %cst_25 = arith.constant dense<0.000000e+00> : vector<2x8xf32>
    %60 = vector.multi_reduction <add>, %59, %cst_25 [2] : vector<2x8x16xf32> to vector<2x8xf32>
    %61 = vector.shape_cast %60 : vector<2x8xf32> to vector<2x8x1xf32>
    %62 = tpu.reciprocal %61 {approx = true} : vector<2x8x1xf32> -> vector<2x8x1xf32>
    %63 = vector.broadcast %62 : vector<2x8x1xf32> to vector<2x8x16xf32>
    %64 = arith.mulf %59, %63 : vector<2x8x16xf32>
    %cst_26 = arith.constant dense<0.000000e+00> : vector<2x8x8xf32>
    %65 = tpu.matmul %64, %53, %cst_26 {dimension_numbers = #tpu.dot_dimension_numbers<[2], [1], [1], [2], [0, 0, 0, 1, 1, 2], [0], [0]>} : vector<2x8x16xf32>, vector<2x16x8xf32>, vector<2x8x8xf32> -> vector<2x8x8xf32>
    %66 = vector.extract_strided_slice %16 {offsets = [0, 0, 24], sizes = [2, 8, 8], strides = [1, 1, 1]} : vector<2x8x32xf32> to vector<2x8x8xf32>
    %67 = vector.extract_strided_slice %18 {offsets = [0, 0, 24], sizes = [2, 16, 8], strides = [1, 1, 1]} : vector<2x16x32xf32> to vector<2x16x8xf32>
    %68 = vector.extract_strided_slice %20 {offsets = [0, 0, 24], sizes = [2, 16, 8], strides = [1, 1, 1]} : vector<2x16x32xf32> to vector<2x16x8xf32>
    %cst_27 = arith.constant dense<0.000000e+00> : vector<2x8x16xf32>
    %69 = tpu.matmul %66, %67, %cst_27 {dimension_numbers = #tpu.dot_dimension_numbers<[2], [2], [1], [1], [0, 0, 0, 1, 1, 1], [0], [0]>} : vector<2x8x8xf32>, vector<2x16x8xf32>, vector<2x8x16xf32> -> vector<2x8x16xf32>
    %cst_28 = arith.constant dense<0xFF800000> : vector<2x8xf32>
    %70 = vector.multi_reduction <maximumf>, %69, %cst_28 [2] : vector<2x8x16xf32> to vector<2x8xf32>
    %71 = vector.shape_cast %70 : vector<2x8xf32> to vector<2x8x1xf32>
    %72 = vector.broadcast %71 : vector<2x8x1xf32> to vector<2x8x16xf32>
    %73 = arith.subf %69, %72 : vector<2x8x16xf32>
    %74 = math.exp %73 : vector<2x8x16xf32>
    %cst_29 = arith.constant dense<0.000000e+00> : vector<2x8xf32>
    %75 = vector.multi_reduction <add>, %74, %cst_29 [2] : vector<2x8x16xf32> to vector<2x8xf32>
    %76 = vector.shape_cast %75 : vector<2x8xf32> to vector<2x8x1xf32>
    %77 = tpu.reciprocal %76 {approx = true} : vector<2x8x1xf32> -> vector<2x8x1xf32>
    %78 = vector.broadcast %77 : vector<2x8x1xf32> to vector<2x8x16xf32>
    %79 = arith.mulf %74, %78 : vector<2x8x16xf32>
    %cst_30 = arith.constant dense<0.000000e+00> : vector<2x8x8xf32>
    %80 = tpu.matmul %79, %68, %cst_30 {dimension_numbers = #tpu.dot_dimension_numbers<[2], [1], [1], [2], [0, 0, 0, 1, 1, 2], [0], [0]>} : vector<2x8x16xf32>, vector<2x16x8xf32>, vector<2x8x8xf32> -> vector<2x8x8xf32>
    %81 = tpu.concatenate %35, %50, %65, %80 in 2 : vector<2x8x8xf32>, vector<2x8x8xf32>, vector<2x8x8xf32>, vector<2x8x8xf32> -> vector<2x8x32xf32>
    %82 = arith.addf %81, %0 : vector<2x8x32xf32>
    %c0_31 = arith.constant 0 : index
    %c0_32 = arith.constant 0 : index
    %c0_33 = arith.constant 0 : index
    %83 = vector.load %arg7[%c0_31, %c0_32, %c0_33] : memref<2x8x32xf32, #tpu.memory_space<vmem>>, vector<2x8x32xf32>
    tpu.vector_store %arg7[%c0_31, %c0_32, %c0_33], %82 {strides = array<i32>} : memref<2x8x32xf32, #tpu.memory_space<vmem>>, vector<2x8x32xf32>,
    return
  }
  func.func @transform_0(%arg0: i32) -> (i32, i32, i32) {
    %c0_i32 = arith.constant 0 : i32
    %c0_i32_0 = arith.constant 0 : i32
    %c0_i32_1 = arith.constant 0 : i32
    return %arg0, %c0_i32, %c0_i32_0 : i32, i32, i32
  }
  func.func @transform_1(%arg0: i32) -> (i32, i32, i32) {
    %c0_i32 = arith.constant 0 : i32
    %c0_i32_0 = arith.constant 0 : i32
    %c0_i32_1 = arith.constant 0 : i32
    return %arg0, %c0_i32, %c0_i32_0 : i32, i32, i32
  }
  func.func @transform_2(%arg0: i32) -> (i32, i32) {
    %c0_i32 = arith.constant 0 : i32
    %c0_i32_0 = arith.constant 0 : i32
    %c0_i32_1 = arith.constant 0 : i32
    return %c0_i32, %c0_i32_0 : i32, i32
  }
  func.func @transform_3(%arg0: i32) -> (i32, i32) {
    %c0_i32 = arith.constant 0 : i32
    %c0_i32_0 = arith.constant 0 : i32
    %c0_i32_1 = arith.constant 0 : i32
    return %c0_i32, %c0_i32_0 : i32, i32
  }
  func.func @transform_4(%arg0: i32) -> (i32, i32) {
    %c0_i32 = arith.constant 0 : i32
    %c0_i32_0 = arith.constant 0 : i32
    %c0_i32_1 = arith.constant 0 : i32
    return %c0_i32, %c0_i32_0 : i32, i32
  }
  func.func @transform_5(%arg0: i32) -> (i32, i32) {
    %c0_i32 = arith.constant 0 : i32
    %c0_i32_0 = arith.constant 0 : i32
    %c0_i32_1 = arith.constant 0 : i32
    return %c0_i32, %c0_i32_0 : i32, i32
  }
  func.func @transform_6(%arg0: i32) -> (i32, i32, i32) {
    %c0_i32 = arith.constant 0 : i32
    %c0_i32_0 = arith.constant 0 : i32
    %c0_i32_1 = arith.constant 0 : i32
    return %arg0, %c0_i32, %c0_i32_0 : i32, i32, i32
  }
}

</mosaic_0001>

<bundles_post_ra>
// kernel: tpu_custom_call.1
= control target key start
LH: loop header
LB: loop body
LE: loop exit
PB: predicated region body
PF: predicated region fallthrough
CT: control target
= control target key end

     0   :  { %11 = vsyncpa [#allocation3], 0  ;;  %s2412_s0 = inlined_call_operand.hbm [shape: f32[2,8,32], index: 0, kind: input, shape index: {}]   ;;  %s2413_s1 = inlined_call_operand.hbm [shape: f32[2,16,16], index: 1, kind: input, shape index: {}]   ;;  %s2414_s2 = inlined_call_operand.hbm [shape: f32[32,32], index: 2, kind: input, shape index: {}]   ;;  %s2415_s3 = inlined_call_operand.vmem [shape: f32[1,32], index: 3, kind: input, shape index: {}]   ;;  %s2416_s4 = inlined_call_operand.hbm [shape: f32[16,64], index: 4, kind: input, shape index: {}]   ;;  %s2417_s5 = inlined_call_operand.vmem [shape: f32[1,64], index: 5, kind: input, shape index: {}]   ;;  %s2418_s6 = inlined_call_operand.hbm [shape: f32[2,8,32], index: 6, kind: output, shape index: {}]  }
   0x1   :  { %12 = vsyncpa [#allocation6], 0 }
   0x2   :  { %13 = vsyncpa [#allocation9], 0 }
   0x3   :  { %14 = vsyncpa [#allocation4], 0  ;;  %s2103_s21 = smov [#allocation5]   ;;  %s2104_s23 = smov [#allocation2]  }
   0x4   :  { %s32_s22 = sshll.u32 %s2103_s21, 4  ;;  %s20_s24 = sshll.u32 %s2104_s23, 4  ;;  %s33_s22 = int_to_ptr.vmem [resolvable:$true] %s32_s22  ;;  %s21_s24 = int_to_ptr.vmem [resolvable:$true] %s20_s24 }
   0x5   :  { %s2003_s25 = scalar_lea.vmem %s33_s22, 512  ;;  %p2008_p1 = scmp.lt.s32.totalorder %s33_s22, %s33_s22 }
   0x6   :  { %p2004_p0 = scmp.ne.s32.totalorder %s33_s22, %s2003_s25  ;;  %p2009_p2 = scmp.lt.s32.totalorder %s2003_s25, %s2003_s25 }
   0x8   :  { %p2010_p3 = por %p2009_p2, %p2008_p1 }
   0xa   :  { %p2011_p4 = pnand %p2010_p3, %p2004_p0 }
   0xc   :  { %2014 = shalt.err (!%p2011_p4)
}
   0xd   :  { %s2105_s26 = smov 128   ;;  %s2106_s27 = smov 8  }
   0xe   :  { %38 = dma.hbm_to_vmem [thread:$0]  %s2413_s1, 512, %s33_s22, [#allocation6], %s2105_s26, %s2105_s26, %s2106_s27  }
   0xf   :  { %s2023_s30 = scalar_lea.vmem %s21_s24, 256  ;;  %p2028_p6 = scmp.lt.s32.totalorder %s21_s24, %s21_s24 }
  0x10   :  { %p2024_p5 = scmp.ne.s32.totalorder %s21_s24, %s2023_s30  ;;  %p2029_p7 = scmp.lt.s32.totalorder %s2023_s30, %s2023_s30 }
  0x12   :  { %p2030_p8 = por %p2029_p7, %p2028_p6 }
  0x14   :  { %p2031_p9 = pnand %p2030_p8, %p2024_p5 }
  0x16   :  { %2034 = shalt.err (!%p2031_p9)
}
  0x17   :  { %26 = dma.hbm_to_vmem [thread:$0]  %s2412_s0, 256, %s21_s24, [#allocation3], %s2105_s26, %s2105_s26, %s2106_s27  }
  0x18   :  { %s2107_s9 = smov [#allocation7]   ;;  %s2108_s11 = smov [#allocation8]  }
  0x19   :  { %s44_s10 = sshll.u32 %s2107_s9, 4  ;;  %s58_s12 = sshll.u32 %s2108_s11, 4  ;;  %s45_s10 = int_to_ptr.vmem [resolvable:$true] %s44_s10  ;;  %s59_s12 = int_to_ptr.vmem [resolvable:$true] %s58_s12 }
  0x1a   :  { %s2043_s1 = scalar_lea.vmem %s45_s10, 512  ;;  %p2048_p11 = scmp.lt.s32.totalorder %s45_s10, %s45_s10 }
  0x1b   :  { %p2044_p10 = scmp.ne.s32.totalorder %s45_s10, %s2043_s1  ;;  %p2049_p12 = scmp.lt.s32.totalorder %s2043_s1, %s2043_s1 }
  0x1d   :  { %p2050_p13 = por %p2049_p12, %p2048_p11 }
  0x1f   :  { %p2051_p0 = pnand %p2050_p13, %p2044_p10 }
  0x21   :  { %2054 = shalt.err (!%p2051_p0)
}
  0x22   :  { %50 = dma.hbm_to_vmem [thread:$0]  %s2414_s2, 512, %s45_s10, [#allocation6], %s2105_s26, %s2105_s26, %s2106_s27  }
  0x23   :  { %s2063_s0 = scalar_lea.vmem %s59_s12, 256  ;;  %p2068_p2 = scmp.lt.s32.totalorder %s59_s12, %s59_s12 }
  0x24   :  { %p2064_p1 = scmp.ne.s32.totalorder %s59_s12, %s2063_s0  ;;  %p2069_p3 = scmp.lt.s32.totalorder %s2063_s0, %s2063_s0 }
  0x26   :  { %p2070_p4 = por %p2069_p3, %p2068_p2 }
  0x28   :  { %p2071_p5 = pnand %p2070_p4, %p2064_p1 }
  0x2a   :  { %2074 = shalt.err (!%p2071_p5)
}
  0x2b   :  { %64 = dma.hbm_to_vmem [thread:$0]  %s2416_s4, 256, %s59_s12, [#allocation9], %s2105_s26, %s2105_s26, %s2106_s27  }
  0x2c   :  { %2095 = dma.done.wait [#allocation3], 256  }
  0x2d   :  { %2096 = vsyncadd [#allocation3], 4294967040 }
  0x2e   :  { %2097 = dma.done.wait [#allocation6], 1024  }
  0x2f   :  { %2098 = vsyncadd [#allocation6], 4294966272 }
  0x30   :  { %2099 = dma.done.wait [#allocation9], 256  }
  0x31   :  { %2100 = vsyncadd [#allocation9], 4294967040  ;;  %v88_v0 = vld [vmem:[#allocation7 + $0x18] sm:$0xff]  ;;  %v179_v1 = vld [vmem:[#allocation8 + $0x8] sm:$0xff]  ;;  %vm187_vm0 = vcmask 130048   ;;  %vm96_vm1 = vcmask 261120  }
  0x32   :  { %v87_v2 = vld [vmem:[#allocation7 + $0x10] sm:$0xff]  ;;  %1812 = vmatprep.subr.mxu0 %v88_v0  ;;  %1823 = vmatprep.subr.mxu1 %v179_v1  ;;  %v178_v3 = vld [vmem:[#allocation8] sm:$0xff]  ;;  %v86_v5 = vld [vmem:[#allocation7 + $0x8] sm:$0xff]  ;;  %v2109_v12 = vmov 0.0   ;;  %vm2110_vm2 = vmmov 0   ;;  %vm287_vm3 = vcmask 64512  }
  0x33   :  { %1813 = vmatpush3.msra.mxu0 %v88_v0  ;;  %1824 = vmatpush3.msra.mxu1 %v179_v1  ;;  %v81_v4 = vld [vmem:[#allocation5] sm:$0xff]  ;;  %v82_v6 = vld [vmem:[#allocation5 + $0x8] sm:$0xff]  ;;  %v2180_v8 = vld [vmem:[#allocation2] sm:$0xff]  ;;  %s2113_s19 = smov 88   ;;  %s2114_s20 = smov 112   ;;  %vm1686_vm4 = vcmask 195584  }
  0x34   :  { %1814 = vmatprep.subr.mxu0 %v87_v2  ;;  %1825 = vmatprep.subr.mxu1 %v178_v3  ;;  %v85_v7 = vld [vmem:[#allocation7] sm:$0xff]  ;;  %v83_v9 = vld [vmem:[#allocation5 + $0x10] sm:$0xff]  ;;  %v2184_v10 = vld [vmem:[#allocation2 + $0x8] sm:$0xff]  ;;  %s2115_s21 = smov 80   ;;  %s2116_s22 = smov 104  }
  0x35   :  { %1815 = vmatpush3.msra.mxu0 %v87_v2  ;;  %1826 = vmatpush3.msra.mxu1 %v178_v3  ;;  %v84_v11 = vld [vmem:[#allocation5 + $0x18] sm:$0xff]  ;;  %v1715_v13 = vld [vmem:[%s2417_s5] ss:$0 sm:$0xff]  ;;  %s2111_s5 = smov 96   ;;  %s2117_s23 = smov 72  }
  0x36   :  { %1827 = vmatprep.mubr.msk.f32.mxu1 %vm187_vm0, %v81_v4  ;;  %1816 = vmatprep.subr.mxu0 %v86_v5  ;;  %v1712_v20 = vld [vmem:[%s2415_s3] ss:$0 sm:$0xff]  ;;  %s2112_s3 = smov 120   ;;  %s2118_s24 = smov 16  }
  0x37   :  { %1828 = vmatmul.mubr.msk.f32.vlgmr.msra.gmra.mxu1 %vm187_vm0, %v82_v6  ;;  %1817 = vmatpush3.msra.mxu0 %v86_v5  ;;  %s2119_s25 = smov 24   ;;  %s2120_s28 = smov [#allocation10]  }
  0x38   :  { %1818 = vmatprep.subr.mxu0 %v85_v7  ;;  %1820 = vmatprep.mubr.msk.f32.mxu0 %vm96_vm1, %v2180_v8  ;;  %s1698_s29 = sshll.u32 %s2120_s28, 4  ;;  %s1699_s29 = int_to_ptr.vmem [resolvable:$true] %s1698_s29 }
  0x39   :  { %1819 = vmatpush3.msra.mxu0 %v85_v7  ;;  %1830 = vmatprep.mubr.msk.f32.mxu1 %vm187_vm0, %v83_v9  ;;  %s2075_s30 = scalar_lea.vmem %s1699_s29, 256  ;;  %p2080_p7 = scmp.lt.s32.totalorder %s1699_s29, %s1699_s29 }
  0x3a   :  { %1821 = vmatmul.mubr.msk.f32.vlgmr.msra.gmra.mxu0 %vm96_vm1, %v2184_v10  ;;  %1833 = vmatprep.subr.mxu1 %v2109_v12  ;;  %p2076_p6 = scmp.ne.s32.totalorder %s1699_s29, %s2075_s30  ;;  %p2081_p8 = scmp.lt.s32.totalorder %s2075_s30, %s2075_s30 }
  0x3b   :  { %1831 = vmatmul.mubr.msk.f32.gmra.mxu1 %vm187_vm0, %v84_v11  ;;  %1840 = vmatprep.subr.mxu0 %v2109_v12 }
  0x3c   :  { %1837 = vmatprep.mubr.msk.f32.mxu1 %vm2110_vm2, %v2109_v12  ;;  %1844 = vmatprep.mubr.msk.f32.mxu0 %vm2110_vm2, %v2109_v12  ;;  %p2082_p9 = por %p2081_p8, %p2080_p7 }
  0x3e   :  { %p2083_p10 = pnand %p2082_p9, %p2076_p6 }
  0xf7   :  { %v1829_v14 = vpop.f32.mrf.mxu1 }
  0xf8   :  { %v2201_v15 = vadd.f32 %v1829_v14, %v1715_v13 }
  0xf9   :  { %v266_v16 = vpop.f32.mrf.mxu1 }
  0xfa   :  { %1834 = vmatpush3.xpose.msk.msra.mxu1 %vm287_vm3, %v2201_v15  ;;  %v1822_v17 = vpop.f32.mrf.mxu0  ;;  %v2206_v19 = vadd.f32 %v1715_v13, %v266_v16 }
  0xfb   :  { %v1832_v18 = vpop.f32.mrf.mxu1  ;;  %1835 = vmatprep.subr.mxu1 %v2109_v12  ;;  %v175_v26 = vadd.f32 %v1822_v17, %v1712_v20 }
  0xfc   :  { %v2211_v21 = vadd.f32 %v1832_v18, %v1715_v13  ;;  %v169_v22 = vpop.f32.mrf.mxu0 }
  0xfd   :  { %v170_v23 = vadd.f32 %v1712_v20, %v169_v22  ;;  %v276_v24 = vpop.f32.mrf.mxu1  ;;  %v2233_v28 = vmul.f32 0.35355338, %v175_v26 }
  0xfe   :  { %549 = vrot.lane.b32.xlu1 %v2211_v21, %s2111_s5  ;;  %1836 = vmatpush3.xpose.msk.msra.mxu1 %vm287_vm3, %v2206_v19  ;;  %v2223_v27 = vadd.f32 %v1715_v13, %v276_v24 }
  0xff   :  { %v2217_v25 = vmul.f32 0.35355338, %v170_v23  ;;  %1841 = vmatpush3.xpose.msk.msra.mxu0 %vm287_vm3, %v2211_v21  ;;  %1847 = vmatprep.subr.mxu1 %v2109_v12 }
 0x100   :  { %1842 = vmatprep.subr.mxu0 %v2109_v12 }
 0x101   :  { %1838 = vmatmul.mubr.msk.f32.vlgmr.msra.gmra.mxu1 %vm287_vm3, %v2217_v25 }
 0x102   :  { %468 = vrot.lane.b32.xlu1 %v2206_v19, %s2111_s5  ;;  %1851 = vmatprep.mubr.msk.f32.mxu1 %vm2110_vm2, %v2109_v12 }
 0x103   :  { %1843 = vmatpush3.xpose.msk.msra.mxu0 %vm287_vm3, %v2223_v27 }
 0x104   :  { %1854 = vmatprep.subr.mxu0 %v2109_v12 }
 0x106   :  { %1845 = vmatmul.mubr.msk.f32.vlgmr.msra.gmra.mxu0 %vm287_vm3, %v2233_v28  ;;  %547 = vrot.lane.b32.xlu1 %v2223_v27, %s2111_s5 }
 0x107   :  { %1858 = vmatprep.mubr.msk.f32.mxu0 %vm2110_vm2, %v2109_v12 }
 0x10a   :  { %712 = vrot.lane.b32.xlu1 %v2211_v21, %s2112_s3 }
 0x10e   :  { %710 = vrot.lane.b32.xlu1 %v2223_v27, %s2112_s3 }
 0x170   :  { %v550_v29 = vpop.permute.xlu1 %549 }
 0x171   :  { %1855 = vmatpush3.msra.mxu0 %v550_v29 }
 0x172   :  { %1856 = vmatprep.subr.mxu0 %v2109_v12 }
 0x174   :  { %v469_v30 = vpop.permute.xlu1 %468 }
 0x178   :  { %v548_v31 = vpop.permute.xlu1 %547 }
 0x179   :  { %1857 = vmatpush3.msra.mxu0 %v548_v31 }
 0x17a   :  { %1868 = vmatprep.subr.mxu0 %v2109_v12 }
 0x17c   :  { %v713_v49 = vpop.permute.xlu1 %712 }
 0x180   :  { %v711_v50 = vpop.permute.xlu1 %710 }
 0x1c1   :  { %v363_v32 = vpop.f32.mrf.mxu1 }
 0x1c2   :  { %v446_v33 = vsel %vm187_vm0, %v363_v32, -inf }
 0x1c3   :  { %447 = vmax.xlane.f32.xlu0 %v446_v33  ;;  %v1839_v34 = vpop.f32.mrf.mxu1 }
 0x1c6   :  { %v442_v35 = vpop.f32.mrf.mxu0 }
 0x1c7   :  { %v449_v36 = vsel %vm187_vm0, %v442_v35, -inf }
 0x1c8   :  { %v1846_v37 = vpop.f32.mrf.mxu0  ;;  %450 = vmax.xlane.f32.xlu0 %v449_v36 }
 0x1de   :  { %470 = vrot.lane.b32.xlu0 %v2201_v15, %s2111_s5 }
 0x1e2   :  { %630 = vrot.lane.b32.xlu0 %v2201_v15, %s2112_s3 }
 0x1e6   :  { %628 = vrot.lane.b32.xlu0 %v2206_v19, %s2112_s3 }
 0x1ea   :  { %626 = vrot.lane.b32.xlu0 %v2217_v25, %s2112_s3 }
 0x24c   :  { %v448_v38 = vpop.xlane.xlu0 %447 }
 0x24d   :  { %v452_v39 = vsub.f32 %v363_v32, %v448_v38 }
 0x24f   :  { %v454_v40 = vmul.f32 1.442695, %v452_v39 }
 0x251   :  { %1963 = vpow2.f32 %v454_v40  ;;  %v451_v41 = vpop.xlane.xlu0 %450 }
 0x252   :  { %v453_v42 = vsub.f32 %v442_v35, %v451_v41 }
 0x254   :  { %v456_v43 = vmul.f32 1.442695, %v453_v42 }
 0x255   :  { %v471_v44 = vpop.permute.xlu0 %470 }
 0x256   :  { %1965 = vpow2.f32 %v456_v43  ;;  %1848 = vmatpush3.msra.mxu1 %v471_v44 }
 0x257   :  { %1849 = vmatprep.subr.mxu1 %v2109_v12 }
 0x258   :  { %1850 = vmatpush3.msra.mxu1 %v469_v30 }
 0x259   :  { %1861 = vmatprep.subr.mxu1 %v2109_v12  ;;  %v631_v53 = vpop.permute.xlu0 %630 }
 0x25d   :  { %v629_v56 = vpop.permute.xlu0 %628 }
 0x25e   :  { %v1964_v45 = vpop.eup %1963 }
 0x25f   :  { %v458_v46 = vsel %vm187_vm0, %v1964_v45, 0.0 }
 0x260   :  { %459 = vadd.xlane.f32.xlu1 %v458_v46 }
 0x261   :  { %v627_v59 = vpop.permute.xlu0 %626 }
 0x263   :  { %v1966_v47 = vpop.eup %1965 }
 0x264   :  { %v461_v48 = vsel %vm187_vm0, %v1966_v47, 0.0 }
 0x265   :  { %462 = vadd.xlane.f32.xlu1 %v461_v48 }
 0x276   :  { %708 = vrot.lane.b32.xlu1 %v2233_v28, %s2112_s3 }
 0x2e9   :  { %v460_v51 = vpop.xlane.xlu1 %459 }
 0x2ea   :  { %1967 = vrcp.f32 %v460_v51 }
 0x2ee   :  { %v463_v52 = vpop.xlane.xlu1 %462 }
 0x2ef   :  { %1969 = vrcp.f32 %v463_v52 }
 0x2f2   :  { %v709_v60 = vpop.permute.xlu1 %708 }
 0x2f7   :  { %v1968_v54 = vpop.eup %1967 }
 0x2f8   :  { %v466_v55 = vmul.f32 %v1968_v54, %v1964_v45 }
 0x2fa   :  { %1852 = vmatmul.mubr.msk.f32.vlgmr.msra.gmra.mxu1 %vm187_vm0, %v466_v55 }
 0x2fb   :  { %1862 = vmatpush3.xpose.msk.msra.mxu1 %vm287_vm3, %v631_v53  ;;  %1865 = vmatprep.mubr.msk.f32.mxu1 %vm2110_vm2, %v2109_v12 }
 0x2fc   :  { %v1970_v57 = vpop.eup %1969  ;;  %1863 = vmatprep.subr.mxu1 %v2109_v12 }
 0x2fd   :  { %v467_v58 = vmul.f32 %v1970_v57, %v1966_v47 }
 0x2ff   :  { %1859 = vmatmul.mubr.msk.f32.vlgmr.msra.gmra.mxu0 %vm187_vm0, %v467_v58  ;;  %1864 = vmatpush3.xpose.msk.msra.mxu1 %vm287_vm3, %v629_v56 }
 0x300   :  { %1869 = vmatpush3.xpose.msk.msra.mxu0 %vm287_vm3, %v713_v49  ;;  %1872 = vmatprep.mubr.msk.f32.mxu0 %vm2110_vm2, %v2109_v12 }
 0x301   :  { %1870 = vmatprep.subr.mxu0 %v2109_v12  ;;  %1875 = vmatprep.subr.mxu1 %v2109_v12 }
 0x302   :  { %1866 = vmatmul.mubr.msk.f32.vlgmr.msra.gmra.mxu1 %vm287_vm3, %v627_v59 }
 0x303   :  { %1879 = vmatprep.mubr.msk.f32.mxu1 %vm2110_vm2, %v2109_v12 }
 0x304   :  { %1871 = vmatpush3.xpose.msk.msra.mxu0 %vm287_vm3, %v711_v50 }
 0x305   :  { %1882 = vmatprep.subr.mxu0 %v2109_v12 }
 0x307   :  { %1873 = vmatmul.mubr.msk.f32.vlgmr.msra.gmra.mxu0 %vm287_vm3, %v709_v60 }
 0x308   :  { %1886 = vmatprep.mubr.msk.f32.mxu0 %vm2110_vm2, %v2109_v12 }
 0x3ba   :  { %v2284_v61 = vpop.f32.mrf.mxu1 }
 0x3bc   :  { %v1853_v62 = vpop.f32.mrf.mxu1 }
 0x3bf   :  { %v2286_v63 = vpop.f32.mrf.mxu0 }
 0x3c1   :  { %v1860_v0 = vpop.f32.mrf.mxu0 }
 0x3c2   :  { %v704_v1 = vpop.f32.mrf.mxu1 }
 0x3c3   :  { %v790_v2 = vsel %vm187_vm0, %v704_v1, -inf }
 0x3c4   :  { %791 = vmax.xlane.f32.xlu0 %v790_v2  ;;  %v1867_v3 = vpop.f32.mrf.mxu1 }
 0x3c7   :  { %v786_v4 = vpop.f32.mrf.mxu0 }
 0x3c8   :  { %v793_v5 = vsel %vm187_vm0, %v786_v4, -inf }
 0x3c9   :  { %794 = vmax.xlane.f32.xlu1 %v793_v5  ;;  %v1874_v6 = vpop.f32.mrf.mxu0 }
 0x3da   :  { %893 = vrot.lane.b32.xlu1 %v2211_v21, %s2113_s19  ;;  %814 = vrot.lane.b32.xlu0 %v2201_v15, %s2113_s19 }
 0x3de   :  { %812 = vrot.lane.b32.xlu1 %v2206_v19, %s2113_s19  ;;  %974 = vrot.lane.b32.xlu0 %v2201_v15, %s2114_s20 }
 0x3e2   :  { %891 = vrot.lane.b32.xlu1 %v2223_v27, %s2113_s19 }
 0x3e6   :  { %1056 = vrot.lane.b32.xlu1 %v2211_v21, %s2114_s20 }
 0x3ea   :  { %1054 = vrot.lane.b32.xlu1 %v2223_v27, %s2114_s20 }
 0x3ee   :  { %1052 = vrot.lane.b32.xlu1 %v2233_v28, %s2114_s20 }
 0x44d   :  { %v792_v7 = vpop.xlane.xlu0 %791 }
 0x44e   :  { %v796_v9 = vsub.f32 %v704_v1, %v792_v7 }
 0x450   :  { %v798_v11 = vmul.f32 1.442695, %v796_v9 }
 0x451   :  { %v815_v13 = vpop.permute.xlu0 %814 }
 0x452   :  { %1971 = vpow2.f32 %v798_v11  ;;  %v795_v14 = vpop.xlane.xlu1 %794  ;;  %1876 = vmatpush3.msra.mxu1 %v815_v13 }
 0x453   :  { %v797_v16 = vsub.f32 %v786_v4, %v795_v14  ;;  %1877 = vmatprep.subr.mxu1 %v2109_v12 }
 0x455   :  { %v800_v17 = vmul.f32 1.442695, %v797_v16  ;;  %v975_v30 = vpop.permute.xlu0 %974 }
 0x456   :  { %v894_v18 = vpop.permute.xlu1 %893 }
 0x457   :  { %1973 = vpow2.f32 %v800_v17  ;;  %1883 = vmatpush3.msra.mxu0 %v894_v18 }
 0x458   :  { %1884 = vmatprep.subr.mxu0 %v2109_v12 }
 0x45a   :  { %v813_v20 = vpop.permute.xlu1 %812 }
 0x45b   :  { %1878 = vmatpush3.msra.mxu1 %v813_v20 }
 0x45c   :  { %1889 = vmatprep.subr.mxu1 %v2109_v12 }
 0x45e   :  { %v892_v22 = vpop.permute.xlu1 %891 }
 0x45f   :  { %v1972_v23 = vpop.eup %1971  ;;  %1885 = vmatpush3.msra.mxu0 %v892_v22 }
 0x460   :  { %v802_v24 = vsel %vm187_vm0, %v1972_v23, 0.0  ;;  %1896 = vmatprep.subr.mxu0 %v2109_v12 }
 0x461   :  { %803 = vadd.xlane.f32.xlu0 %v802_v24 }
 0x462   :  { %v1057_v35 = vpop.permute.xlu1 %1056 }
 0x464   :  { %v1974_v26 = vpop.eup %1973 }
 0x465   :  { %v805_v29 = vsel %vm187_vm0, %v1974_v26, 0.0 }
 0x466   :  { %806 = vadd.xlane.f32.xlu0 %v805_v29  ;;  %v1055_v39 = vpop.permute.xlu1 %1054 }
 0x46a   :  { %v1053_v41 = vpop.permute.xlu1 %1052 }
 0x47c   :  { %972 = vrot.lane.b32.xlu0 %v2206_v19, %s2114_s20 }
 0x480   :  { %970 = vrot.lane.b32.xlu0 %v2217_v25, %s2114_s20 }
 0x4ea   :  { %v804_v31 = vpop.xlane.xlu0 %803 }
 0x4eb   :  { %1975 = vrcp.f32 %v804_v31 }
 0x4ef   :  { %v807_v32 = vpop.xlane.xlu0 %806 }
 0x4f0   :  { %1977 = vrcp.f32 %v807_v32 }
 0x4f3   :  { %v973_v36 = vpop.permute.xlu0 %972 }
 0x4f7   :  { %v971_v40 = vpop.permute.xlu0 %970 }
 0x4f8   :  { %v1976_v33 = vpop.eup %1975 }
 0x4f9   :  { %v810_v34 = vmul.f32 %v1976_v33, %v1972_v23 }
 0x4fb   :  { %1880 = vmatmul.mubr.msk.f32.vlgmr.msra.gmra.mxu1 %vm187_vm0, %v810_v34 }
 0x4fc   :  { %1890 = vmatpush3.xpose.msk.msra.mxu1 %vm287_vm3, %v975_v30  ;;  %1893 = vmatprep.mubr.msk.f32.mxu1 %vm2110_vm2, %v2109_v12 }
 0x4fd   :  { %v1978_v37 = vpop.eup %1977  ;;  %1891 = vmatprep.subr.mxu1 %v2109_v12 }
 0x4fe   :  { %v811_v38 = vmul.f32 %v1978_v37, %v1974_v26 }
 0x500   :  { %1887 = vmatmul.mubr.msk.f32.vlgmr.msra.gmra.mxu0 %vm187_vm0, %v811_v38  ;;  %1892 = vmatpush3.xpose.msk.msra.mxu1 %vm287_vm3, %v973_v36 }
 0x501   :  { %1897 = vmatpush3.xpose.msk.msra.mxu0 %vm287_vm3, %v1057_v35  ;;  %1900 = vmatprep.mubr.msk.f32.mxu0 %vm2110_vm2, %v2109_v12 }
 0x502   :  { %1898 = vmatprep.subr.mxu0 %v2109_v12  ;;  %1903 = vmatprep.subr.mxu1 %v2109_v12 }
 0x503   :  { %1894 = vmatmul.mubr.msk.f32.vlgmr.msra.gmra.mxu1 %vm287_vm3, %v971_v40 }
 0x504   :  { %1907 = vmatprep.mubr.msk.f32.mxu1 %vm2110_vm2, %v2109_v12 }
 0x505   :  { %1899 = vmatpush3.xpose.msk.msra.mxu0 %vm287_vm3, %v1055_v39 }
 0x506   :  { %1910 = vmatprep.subr.mxu0 %v2109_v12 }
 0x508   :  { %1901 = vmatmul.mubr.msk.f32.vlgmr.msra.gmra.mxu0 %vm287_vm3, %v1053_v41 }
 0x509   :  { %1914 = vmatprep.mubr.msk.f32.mxu0 %vm2110_vm2, %v2109_v12 }
 0x5bb   :  { %v2332_v42 = vpop.f32.mrf.mxu1 }
 0x5bd   :  { %v1881_v43 = vpop.f32.mrf.mxu1 }
 0x5c0   :  { %v2334_v44 = vpop.f32.mrf.mxu0 }
 0x5c2   :  { %v1888_v45 = vpop.f32.mrf.mxu0 }
 0x5c3   :  { %v1048_v46 = vpop.f32.mrf.mxu1 }
 0x5c4   :  { %v1134_v47 = vsel %vm187_vm0, %v1048_v46, -inf }
 0x5c5   :  { %1135 = vmax.xlane.f32.xlu0 %v1134_v47  ;;  %v1895_v48 = vpop.f32.mrf.mxu1 }
 0x5c8   :  { %v1130_v49 = vpop.f32.mrf.mxu0 }
 0x5c9   :  { %v1137_v50 = vsel %vm187_vm0, %v1130_v49, -inf }
 0x5ca   :  { %1138 = vmax.xlane.f32.xlu1 %v1137_v50  ;;  %v1902_v51 = vpop.f32.mrf.mxu0 }
 0x5db   :  { %1237 = vrot.lane.b32.xlu1 %v2211_v21, %s2115_s21  ;;  %1158 = vrot.lane.b32.xlu0 %v2201_v15, %s2115_s21 }
 0x5df   :  { %1156 = vrot.lane.b32.xlu1 %v2206_v19, %s2115_s21  ;;  %1318 = vrot.lane.b32.xlu0 %v2201_v15, %s2116_s22 }
 0x5e3   :  { %1235 = vrot.lane.b32.xlu1 %v2223_v27, %s2115_s21 }
 0x5e7   :  { %1400 = vrot.lane.b32.xlu1 %v2211_v21, %s2116_s22 }
 0x5eb   :  { %1398 = vrot.lane.b32.xlu1 %v2223_v27, %s2116_s22 }
 0x5ef   :  { %1396 = vrot.lane.b32.xlu1 %v2233_v28, %s2116_s22 }
 0x64e   :  { %v1136_v52 = vpop.xlane.xlu0 %1135 }
 0x64f   :  { %v1140_v53 = vsub.f32 %v1048_v46, %v1136_v52 }
 0x651   :  { %v1142_v54 = vmul.f32 1.442695, %v1140_v53 }
 0x652   :  { %v1159_v55 = vpop.permute.xlu0 %1158 }
 0x653   :  { %1979 = vpow2.f32 %v1142_v54  ;;  %v1139_v56 = vpop.xlane.xlu1 %1138  ;;  %1904 = vmatpush3.msra.mxu1 %v1159_v55 }
 0x654   :  { %v1141_v57 = vsub.f32 %v1130_v49, %v1139_v56  ;;  %1905 = vmatprep.subr.mxu1 %v2109_v12 }
 0x656   :  { %v1144_v58 = vmul.f32 1.442695, %v1141_v57  ;;  %v1319_v3 = vpop.permute.xlu0 %1318 }
 0x657   :  { %v1238_v59 = vpop.permute.xlu1 %1237 }
 0x658   :  { %1981 = vpow2.f32 %v1144_v58  ;;  %1911 = vmatpush3.msra.mxu0 %v1238_v59 }
 0x659   :  { %1912 = vmatprep.subr.mxu0 %v2109_v12 }
 0x65b   :  { %v1157_v60 = vpop.permute.xlu1 %1156 }
 0x65c   :  { %1906 = vmatpush3.msra.mxu1 %v1157_v60 }
 0x65d   :  { %1917 = vmatprep.subr.mxu1 %v2109_v12 }
 0x65f   :  { %v1236_v28 = vpop.permute.xlu1 %1235 }
 0x660   :  { %v1980_v62 = vpop.eup %1979  ;;  %1913 = vmatpush3.msra.mxu0 %v1236_v28 }
 0x661   :  { %v1146_v0 = vsel %vm187_vm0, %v1980_v62, 0.0  ;;  %1924 = vmatprep.subr.mxu0 %v2109_v12 }
 0x662   :  { %1147 = vadd.xlane.f32.xlu0 %v1146_v0 }
 0x663   :  { %v1401_v9 = vpop.permute.xlu1 %1400 }
 0x665   :  { %v1982_v1 = vpop.eup %1981 }
 0x666   :  { %v1149_v2 = vsel %vm187_vm0, %v1982_v1, 0.0 }
 0x667   :  { %1150 = vadd.xlane.f32.xlu0 %v1149_v2  ;;  %v1399_v14 = vpop.permute.xlu1 %1398 }
 0x66b   :  { %v1397_v17 = vpop.permute.xlu1 %1396 }
 0x67d   :  { %1316 = vrot.lane.b32.xlu0 %v2206_v19, %s2116_s22 }
 0x681   :  { %1314 = vrot.lane.b32.xlu0 %v2217_v25, %s2116_s22 }
 0x6eb   :  { %v1148_v4 = vpop.xlane.xlu0 %1147 }
 0x6ec   :  { %1983 = vrcp.f32 %v1148_v4 }
 0x6f0   :  { %v1151_v5 = vpop.xlane.xlu0 %1150 }
 0x6f1   :  { %1985 = vrcp.f32 %v1151_v5 }
 0x6f4   :  { %v1317_v11 = vpop.permute.xlu0 %1316 }
 0x6f8   :  { %v1315_v16 = vpop.permute.xlu0 %1314 }
 0x6f9   :  { %v1984_v6 = vpop.eup %1983 }
 0x6fa   :  { %v1154_v7 = vmul.f32 %v1984_v6, %v1980_v62 }
 0x6fc   :  { %1908 = vmatmul.mubr.msk.f32.vlgmr.msra.gmra.mxu1 %vm187_vm0, %v1154_v7 }
 0x6fd   :  { %1918 = vmatpush3.xpose.msk.msra.mxu1 %vm287_vm3, %v1319_v3  ;;  %1921 = vmatprep.mubr.msk.f32.mxu1 %vm2110_vm2, %v2109_v12 }
 0x6fe   :  { %v1986_v13 = vpop.eup %1985  ;;  %1919 = vmatprep.subr.mxu1 %v2109_v12 }
 0x6ff   :  { %v1155_v25 = vmul.f32 %v1986_v13, %v1982_v1 }
 0x701   :  { %1915 = vmatmul.mubr.msk.f32.vlgmr.msra.gmra.mxu0 %vm187_vm0, %v1155_v25  ;;  %1920 = vmatpush3.xpose.msk.msra.mxu1 %vm287_vm3, %v1317_v11 }
 0x702   :  { %1925 = vmatpush3.xpose.msk.msra.mxu0 %vm287_vm3, %v1401_v9  ;;  %1928 = vmatprep.mubr.msk.f32.mxu0 %vm2110_vm2, %v2109_v12 }
 0x703   :  { %1926 = vmatprep.subr.mxu0 %v2109_v12  ;;  %1931 = vmatprep.subr.mxu1 %v2109_v12 }
 0x704   :  { %1922 = vmatmul.mubr.msk.f32.vlgmr.msra.gmra.mxu1 %vm287_vm3, %v1315_v16 }
 0x705   :  { %1935 = vmatprep.mubr.msk.f32.mxu1 %vm2110_vm2, %v2109_v12 }
 0x706   :  { %1927 = vmatpush3.xpose.msk.msra.mxu0 %vm287_vm3, %v1399_v14 }
 0x707   :  { %1938 = vmatprep.subr.mxu0 %v2109_v12 }
 0x709   :  { %1929 = vmatmul.mubr.msk.f32.vlgmr.msra.gmra.mxu0 %vm287_vm3, %v1397_v17 }
 0x70a   :  { %1942 = vmatprep.mubr.msk.f32.mxu0 %vm2110_vm2, %v2109_v12 }
 0x7bc   :  { %v1231_v18 = vpop.f32.mrf.mxu1 }
 0x7be   :  { %v1909_v20 = vpop.f32.mrf.mxu1 }
 0x7c1   :  { %v1310_v22 = vpop.f32.mrf.mxu0 }
 0x7c3   :  { %v1916_v23 = vpop.f32.mrf.mxu0 }
 0x7c4   :  { %v1392_v24 = vpop.f32.mrf.mxu1 }
 0x7c5   :  { %v1478_v26 = vsel %vm187_vm0, %v1392_v24, -inf }
 0x7c6   :  { %1479 = vmax.xlane.f32.xlu0 %v1478_v26  ;;  %v1923_v29 = vpop.f32.mrf.mxu1 }
 0x7c9   :  { %v1474_v30 = vpop.f32.mrf.mxu0 }
 0x7ca   :  { %v1481_v31 = vsel %vm187_vm0, %v1474_v30, -inf }
 0x7cb   :  { %1482 = vmax.xlane.f32.xlu1 %v1481_v31  ;;  %v1930_v32 = vpop.f32.mrf.mxu0 }
 0x7dc   :  { %1581 = vrot.lane.b32.xlu1 %v2211_v21, %s2117_s23 }
 0x7e0   :  { %1500 = vrot.lane.b32.xlu1 %v2206_v19, %s2117_s23 }
 0x7e4   :  { %1579 = vrot.lane.b32.xlu1 %v2223_v27, %s2117_s23 }
 0x7e8   :  { %1662 = vrot.lane.b32.xlu1 %v2334_v44, %s2106_s27 }
 0x7ec   :  { %1670 = vrot.lane.b32.xlu1 %v1310_v22, %s2118_s24 }
 0x84f   :  { %v1480_v33 = vpop.xlane.xlu0 %1479 }
 0x850   :  { %v1484_v34 = vsub.f32 %v1392_v24, %v1480_v33 }
 0x852   :  { %v1486_v35 = vmul.f32 1.442695, %v1484_v34 }
 0x854   :  { %1987 = vpow2.f32 %v1486_v35  ;;  %v1483_v36 = vpop.xlane.xlu1 %1482 }
 0x855   :  { %v1485_v37 = vsub.f32 %v1474_v30, %v1483_v36 }
 0x857   :  { %v1488_v38 = vmul.f32 1.442695, %v1485_v37 }
 0x858   :  { %v1582_v39 = vpop.permute.xlu1 %1581 }
 0x859   :  { %1989 = vpow2.f32 %v1488_v38  ;;  %1939 = vmatpush3.msra.mxu0 %v1582_v39 }
 0x85a   :  { %1940 = vmatprep.subr.mxu0 %v2109_v12 }
 0x85c   :  { %v1501_v19 = vpop.permute.xlu1 %1500 }
 0x860   :  { %v1580_v21 = vpop.permute.xlu1 %1579 }
 0x861   :  { %v1988_v27 = vpop.eup %1987  ;;  %1941 = vmatpush3.msra.mxu0 %v1580_v21 }
 0x862   :  { %v1490_v40 = vsel %vm187_vm0, %v1988_v27, 0.0 }
 0x863   :  { %1491 = vadd.xlane.f32.xlu0 %v1490_v40 }
 0x864   :  { %v1663_v54 = vpop.permute.xlu1 %1662 }
 0x865   :  { %v1683_v28 = vsel %vm287_vm3, %v2286_v63, %v1663_v54 }
 0x866   :  { %v1990_v41 = vpop.eup %1989 }
 0x867   :  { %v1493_v43 = vsel %vm187_vm0, %v1990_v41, 0.0 }
 0x868   :  { %1494 = vadd.xlane.f32.xlu0 %v1493_v43  ;;  %v1671_v58 = vpop.permute.xlu1 %1670 }
 0x869   :  { %v1685_v62 = vsel %vm187_vm0, %v1683_v28, %v1671_v58 }
 0x87e   :  { %1502 = vrot.lane.b32.xlu0 %v2201_v15, %s2117_s23 }
 0x882   :  { %1660 = vrot.lane.b32.xlu0 %v2332_v42, %s2106_s27 }
 0x886   :  { %1668 = vrot.lane.b32.xlu0 %v1231_v18, %s2118_s24 }
 0x8ec   :  { %v1492_v44 = vpop.xlane.xlu0 %1491 }
 0x8ed   :  { %1991 = vrcp.f32 %v1492_v44 }
 0x8f1   :  { %v1495_v45 = vpop.xlane.xlu0 %1494 }
 0x8f2   :  { %1993 = vrcp.f32 %v1495_v45 }
 0x8f5   :  { %v1503_v46 = vpop.permute.xlu0 %1502 }
 0x8f6   :  { %1932 = vmatpush3.msra.mxu1 %v1503_v46 }
 0x8f7   :  { %1933 = vmatprep.subr.mxu1 %v2109_v12 }
 0x8f8   :  { %1934 = vmatpush3.msra.mxu1 %v1501_v19 }
 0x8f9   :  { %v1661_v53 = vpop.permute.xlu0 %1660 }
 0x8fa   :  { %v1992_v47 = vpop.eup %1991  ;;  %v1682_v12 = vsel %vm287_vm3, %v2284_v61, %v1661_v53 }
 0x8fb   :  { %v1498_v48 = vmul.f32 %v1992_v47, %v1988_v27 }
 0x8fd   :  { %1936 = vmatmul.mubr.msk.f32.vlgmr.msra.gmra.mxu1 %vm187_vm0, %v1498_v48  ;;  %v1669_v55 = vpop.permute.xlu0 %1668 }
 0x8fe   :  { %v1684_v56 = vsel %vm187_vm0, %v1682_v12, %v1669_v55 }
 0x8ff   :  { %v1994_v49 = vpop.eup %1993 }
 0x900   :  { %v1499_v50 = vmul.f32 %v1994_v49, %v1990_v41 }
 0x902   :  { %1943 = vmatmul.mubr.msk.f32.vlgmr.msra.gmra.mxu0 %vm187_vm0, %v1499_v50 }
 0x9bd   :  { %v1575_v15 = vpop.f32.mrf.mxu1 }
 0x9be   :  { %1676 = vrot.lane.b32.xlu0 %v1575_v15, %s2119_s25 }
 0x9bf   :  { %v1937_v42 = vpop.f32.mrf.mxu1 }
 0x9c2   :  { %v1654_v51 = vpop.f32.mrf.mxu0 }
 0x9c3   :  { %1678 = vrot.lane.b32.xlu1 %v1654_v51, %s2119_s25 }
 0x9c4   :  { %v1944_v52 = vpop.f32.mrf.mxu0 }
 0xa30   :  { %v1677_v57 = vpop.permute.xlu0 %1676 }
 0xa31   :  { %v1687_v59 = vsel %vm1686_vm4, %v1684_v56, %v1677_v57 }
 0xa32   :  { %v1689_v60 = vadd.f32 %v1687_v59, %v2180_v8 }
 0xa34   :  { %1691 = vst.msk [vmem:[#allocation10] sm:$0xff] %vm96_vm1, %v1689_v60 }
 0xa35   :  { %v1679_v0 = vpop.permute.xlu1 %1678 }
 0xa36   :  { %v1688_v1 = vsel %vm1686_vm4, %v1685_v62, %v1679_v0 }
 0xa37   :  { %v1690_v61 = vadd.f32 %v1688_v1, %v2184_v10 }
 0xa39   :  { %1692 = vst.msk [vmem:[#allocation10 + $0x8] sm:$0xff] %vm96_vm1, %v1690_v61 }
 0xa3a   :  { %2086 = shalt.err (!%p2083_p10)
}
 0xa3b   :  { %1704 = dma.vmem_to_hbm [thread:$0]  %s1699_s29, 256, %s2418_s6, [#allocation4], %s2105_s26, %s2105_s26, %s2106_s27  }
 0xa3c   :  { %2101 = dma.done.wait [#allocation4], 256  }
 0xa3d   :  { %2102 = vsyncadd [#allocation4], 4294967040 }
 0xa3e   :  { %1708 = vsyncpa [#allocation3], 1 }
 0xa3f   :  { %1709 = vsyncpa [#allocation6], 1 }
 0xa40   :  { %1710 = vsyncpa [#allocation9], 1 }
 0xa41   :  { %1711 = vsyncpa [#allocation4], 1 }

</bundles_post_ra>
